<compile_context>
chip_gen: v7x
topology: tpu7x:2x2x1
jax: 0.10.0
libtpu: 0.0.40
codegen_flags: <defaults>
</compile_context>

<pallas_src>
import functools

import jax
import jax.numpy as jnp
from jax.experimental import pallas as pl
from jax.experimental.pallas import tpu as pltpu


# ---------------------------------------------------------------------------
# Fused kernel: (labels @ weight) accumulated over vocab tiles, then L2-norm.
# ---------------------------------------------------------------------------
def _imp_embed_kernel(normalize, eps, labels_ref, w_ref, o_ref, acc_ref):
    k = pl.program_id(1)

    @pl.when(k == 0)
    def _():
        acc_ref[...] = jnp.zeros_like(acc_ref)

    # (tb, tv) @ (tv, D) -> (tb, D), f32 accumulation on the MXU.
    acc_ref[...] += jnp.dot(
        labels_ref[...], w_ref[...], preferred_element_type=jnp.float32
    )

    @pl.when(k == pl.num_programs(1) - 1)
    def _():
        acc = acc_ref[...]
        if normalize:
            # Matches torch: attr / (sqrt((attr**2).sum(1)).unsqueeze(1) + 1e-7)
            norm = jnp.sqrt(jnp.sum(acc * acc, axis=-1, keepdims=True)) + eps
            acc = acc / norm
        o_ref[...] = acc.astype(o_ref.dtype)


def _pick_batch_tile(B):
    """Multiple-of-8 sublane tile; prefer >=2 parallel tiles (v7x megacore)."""
    for t in (128, 64, 32, 16, 8):
        if B % t == 0 and B // t >= 2:
            return t
    for t in (128, 64, 32, 16, 8):
        if B % t == 0:
            return t
    return B  # full dim: always a legal block shape


def _pick_vocab_tile(V, D, max_bytes=4 * 1024 * 1024):
    """Lane-aligned vocab tile; cap weight-block VMEM footprint (v5e-safe)."""
    for t in (2048, 1024, 512, 256, 128):
        if V % t == 0 and t * D * 4 <= max_bytes:
            return t
    return V  # full dim fallback


def imp_embedding_forward(labels, weight, *, normalize=True, eps=1e-7):
    """ImpEmbedding.forward for the deepsets=False path (one fused Pallas call)."""
    B, V = labels.shape
    V2, D = weight.shape
    assert V == V2, (labels.shape, weight.shape)

    labels = labels.astype(jnp.float32)
    weight = weight.astype(jnp.float32)

    tb = _pick_batch_tile(B)
    tv = _pick_vocab_tile(V, D)
    grid = (B // tb, V // tv)

    kernel = functools.partial(_imp_embed_kernel, normalize, eps)
    out = pl.pallas_call(
        kernel,
        out_shape=jax.ShapeDtypeStruct((B, D), jnp.float32),
        grid_spec=pltpu.PrefetchScalarGridSpec(
            num_scalar_prefetch=0,
            grid=grid,
            in_specs=[
                pl.BlockSpec((tb, tv), lambda i, k: (i, k)),  # labels tile
                pl.BlockSpec((tv, D), lambda i, k: (k, 0)),   # weight tile (lane-dense D)
            ],
            out_specs=pl.BlockSpec((tb, D), lambda i, k: (i, 0)),  # resident across k
            scratch_shapes=[pltpu.VMEM((tb, D), jnp.float32)],
        ),
        compiler_params=pltpu.CompilerParams(
            dimension_semantics=("parallel", "arbitrary"),
        ),
    )(labels, weight)
    return out


# TODO(synk): deepsets=True path needs the DeepSets module, which is not defined
# in the provided spec; only the default (sum + normalize) path is implemented.
# The ResidualBlock stack is built in __init__ but never applied in forward(),
# so it is intentionally omitted.


# ---------------------------------------------------------------------------
# Pure-JAX reference (mirrors the PyTorch forward exactly) for validation.
# ---------------------------------------------------------------------------
def imp_embedding_reference(labels, weight, normalize=True, eps=1e-7):
    attr = (weight[None, :, :] * labels[:, :, None]).sum(axis=1)
    if normalize:
        attr = attr / (jnp.sqrt((attr ** 2).sum(axis=1, keepdims=True)) + eps)
    return attr


if __name__ == "__main__":
    # Small shapes consistent with the module: B batches of multi-hot label
    # vectors over a V-word vocabulary, D-dim embeddings.
    B, V, D = 16, 512, 256

    key = jax.random.PRNGKey(0)
    kw, kl = jax.random.split(key)
    weight = (0.1 * jax.random.normal(kw, (V, D))).astype(jnp.float32)
    labels = jax.random.bernoulli(kl, 0.1, (B, V)).astype(jnp.float32)

    out = imp_embedding_forward(labels, weight, normalize=True)
    out = jax.block_until_ready(out)

    ref = imp_embedding_reference(labels, weight, normalize=True)
    assert out.shape == (B, D), out.shape
    assert jnp.all(jnp.isfinite(out))
    assert jnp.allclose(out, ref, atol=1e-4, rtol=1e-4), float(
        jnp.max(jnp.abs(out - ref))
    )
    print("KERNEL_OK")
</pallas_src>

<mosaic_0001>
module attributes {stable_mosaic.version = 11 : i64} {
  func.func @_imp_embed_kernel(%arg0: i32, %arg1: i32, %arg2: memref<8x512xf32, #tpu.memory_space<vmem>>, %arg3: memref<512x256xf32, #tpu.memory_space<vmem>>, %arg4: memref<8x256xf32, #tpu.memory_space<vmem>>, %arg5: memref<8x256xf32, #tpu.memory_space<vmem>>) attributes {dimension_semantics = [#tpu.dimension_semantics<parallel>, #tpu.dimension_semantics<arbitrary>], iteration_bounds = array<i64: 2, 1>, scalar_prefetch = 0 : i64, scratch_operands = 1 : i64, tpu.core_type = #tpu.core_type<tc>, window_params = [{transform_indices = @transform_0, window_bounds = array<i64: 8, 512>}, {transform_indices = @transform_1, window_bounds = array<i64: 512, 256>}, {transform_indices = @transform_2, window_bounds = array<i64: 8, 256>}]} {
    %c0_i32 = arith.constant 0 : i32
    %0 = arith.cmpi eq, %arg1, %c0_i32 : i32
    %1 = arith.extui %0 : i1 to i32
    %c0_i32_0 = arith.constant 0 : i32
    %2 = arith.cmpi ne, %1, %c0_i32_0 : i32
    scf.if %2 {
      %cst_10 = arith.constant 0.000000e+00 : f32
      %12 = vector.broadcast %cst_10 : f32 to vector<8x256xf32>
      %c0_11 = arith.constant 0 : index
      %c0_12 = arith.constant 0 : index
      %13 = vector.load %arg5[%c0_11, %c0_12] : memref<8x256xf32, #tpu.memory_space<vmem>>, vector<8x256xf32>
      tpu.vector_store %arg5[%c0_11, %c0_12], %12 {strides = array<i32>} : memref<8x256xf32, #tpu.memory_space<vmem>>, vector<8x256xf32>,
    } else {
    }
    %c0 = arith.constant 0 : index
    %c0_1 = arith.constant 0 : index
    %3 = vector.load %arg5[%c0, %c0_1] : memref<8x256xf32, #tpu.memory_space<vmem>>, vector<8x256xf32>
    %c0_2 = arith.constant 0 : index
    %c0_3 = arith.constant 0 : index
    %4 = vector.load %arg2[%c0_2, %c0_3] : memref<8x512xf32, #tpu.memory_space<vmem>>, vector<8x512xf32>
    %c0_4 = arith.constant 0 : index
    %c0_5 = arith.constant 0 : index
    %5 = vector.load %arg3[%c0_4, %c0_5] : memref<512x256xf32, #tpu.memory_space<vmem>>, vector<512x256xf32>
    %cst = arith.constant dense<0.000000e+00> : vector<8x256xf32>
    %6 = tpu.matmul %4, %5, %cst {dimension_numbers = #tpu.dot_dimension_numbers<[1], [0], [0], [1], [0, 0, 1, 1], [], []>} : vector<8x512xf32>, vector<512x256xf32>, vector<8x256xf32> -> vector<8x256xf32>
    %7 = arith.addf %3, %6 : vector<8x256xf32>
    %c0_6 = arith.constant 0 : index
    %c0_7 = arith.constant 0 : index
    %8 = vector.load %arg5[%c0_6, %c0_7] : memref<8x256xf32, #tpu.memory_space<vmem>>, vector<8x256xf32>
    tpu.vector_store %arg5[%c0_6, %c0_7], %7 {strides = array<i32>} : memref<8x256xf32, #tpu.memory_space<vmem>>, vector<8x256xf32>,
    %c0_i32_8 = arith.constant 0 : i32
    %9 = arith.cmpi eq, %arg1, %c0_i32_8 : i32
    %10 = arith.extui %9 : i1 to i32
    %c0_i32_9 = arith.constant 0 : i32
    %11 = arith.cmpi ne, %10, %c0_i32_9 : i32
    scf.if %11 {
      %c0_10 = arith.constant 0 : index
      %c0_11 = arith.constant 0 : index
      %12 = vector.load %arg5[%c0_10, %c0_11] : memref<8x256xf32, #tpu.memory_space<vmem>>, vector<8x256xf32>
      %13 = arith.mulf %12, %12 : vector<8x256xf32>
      %cst_12 = arith.constant dense<0.000000e+00> : vector<8xf32>
      %14 = vector.multi_reduction <add>, %13, %cst_12 [1] : vector<8x256xf32> to vector<8xf32>
      %15 = vector.shape_cast %14 : vector<8xf32> to vector<8x1xf32>
      %16 = math.sqrt %15 : vector<8x1xf32>
      %cst_13 = arith.constant 1.000000e-07 : f32
      %17 = vector.broadcast %cst_13 : f32 to vector<8x1xf32>
      %18 = arith.addf %16, %17 : vector<8x1xf32>
      %19 = vector.broadcast %18 : vector<8x1xf32> to vector<8x256xf32>
      %20 = arith.divf %12, %19 : vector<8x256xf32>
      %c0_14 = arith.constant 0 : index
      %c0_15 = arith.constant 0 : index
      %21 = vector.load %arg4[%c0_14, %c0_15] : memref<8x256xf32, #tpu.memory_space<vmem>>, vector<8x256xf32>
      tpu.vector_store %arg4[%c0_14, %c0_15], %20 {strides = array<i32>} : memref<8x256xf32, #tpu.memory_space<vmem>>, vector<8x256xf32>,
    } else {
    }
    return
  }
  func.func @transform_0(%arg0: i32, %arg1: i32) -> (i32, i32) {
    %c0_i32 = arith.constant 0 : i32
    return %arg0, %arg1 : i32, i32
  }
  func.func @transform_1(%arg0: i32, %arg1: i32) -> (i32, i32) {
    %c0_i32 = arith.constant 0 : i32
    %c0_i32_0 = arith.constant 0 : i32
    return %arg1, %c0_i32 : i32, i32
  }
  func.func @transform_2(%arg0: i32, %arg1: i32) -> (i32, i32) {
    %c0_i32 = arith.constant 0 : i32
    %c0_i32_0 = arith.constant 0 : i32
    return %arg0, %c0_i32 : i32, i32
  }
}

</mosaic_0001>

<bundles_post_ra>
// kernel: tpu_custom_call.1
= control target key start
LH: loop header
LB: loop body
LE: loop exit
PB: predicated region body
PF: predicated region fallthrough
CT: control target
= control target key end

     0   :  { %7 = vsyncpa [#allocation4], 0  ;;  %s1234_s0 = inlined_call_operand.hbm [shape: f32[16,512], index: 0, kind: input, shape index: {}]   ;;  %s1235_s1 = inlined_call_operand.hbm [shape: f32[512,256], index: 1, kind: input, shape index: {}]   ;;  %s1236_s2 = inlined_call_operand.hbm [shape: f32[16,256], index: 2, kind: output, shape index: {}]  }
   0x1   :  { %9 = vsyncpa [#allocation4 + $0x1], 0 }
   0x2   :  { %10 = vsyncpa [#allocation7], 0 }
   0x3   :  { %11 = vsyncpa [#allocation5], 0 }
   0x4   :  { %13 = vsyncpa [#allocation5 + $0x1], 0  ;;  %s1013_s9 = smov 0   ;;  %s1015_s10 = smov 0  }
   0x5   :  { %s1017_s11 = smov 0   ;;  %s1019_s12 = smov 0  }
   0x6   :  { %s1021_s13 = smov 0   ;;  %s1023_s14 = smov 0  }
   0x7 LB: > { %s619_s15 = sadd.s32 4294967295, %s991_s14   ;;  %s620_s16 = sadd.s32 4294967294, %s991_s14   ;;  %s991_s14 = sphi %s1023_s14, %s19_s14   ;;  %s987_s13 = sphi %s1021_s13, %s1260_s13   ;;  %s983_s12 = sphi %s1019_s12, %s1259_s12   ;;  %s979_s11 = sphi %s1017_s11, %s1258_s11   ;;  %s975_s10 = sphi %s1015_s10, %s1257_s10   ;;  %s971_s9 = sphi %s1013_s9, %s1256_s9  }
   0x8   : > { %p53_p0 = scmp.ne.s32.totalorder %s975_s10, %s971_s9  ;;  %p1047_p1 = scmp.eq.s32.totalorder %s619_s15, 0 }
   0x9   : > { %p1051_p2 = scmp.eq.s32.totalorder %s619_s15, 1  ;;  %p109_p3 = scmp.eq.s32.totalorder %s620_s16, 1 }
   0xa   : > { %s1241_s17 = scalar_select %p1047_p1, 1, 0 }
   0xb   : > { %s1242_s18 = scalar_select %p1051_p2, 1, 0 }
   0xc   : > { %p1057_p4 = por %p1047_p1, %p53_p0  ;;  %p621_p5 = scmp.ge.s32.totalorder %s991_s14, 1 }
   0xd   : > { %p1062_p6 = por %p109_p3, %p53_p0  ;;  %p116_p7 = scmp.lt.s32.totalorder %s991_s14, 3 }
   0xe   : > { %s1243_s19 = scalar_select %p1057_p4, 1, 0 }
   0xf   : > { %s1244_s20 = scalar_select %p1062_p6, 1, 0 }
  0x10   : > { %p1067_p8 = pnand %p621_p5, %p116_p7  ;;  %s993_s22 = smov [#allocation6]  }
  0x11   : > { %s132_s23 = sshll.u32 %s993_s22, 4  ;;  %s31_s25 = sadd.s32 1, %s987_s13  ;;  %s133_s23 = int_to_ptr.vmem [resolvable:$true] %s132_s23 }
  0x12   : > { %s1245_s21 = scalar_select %p1067_p8, 1, 0 }
  0x13   : > { %p776_p9 = pneg %p1067_p8  ;;  %s847_s28 = scalar_lea.hbm %s1235_s1, 16384 }
  0x14   : > { %p848_p12 = scmp.ne.s32.totalorder %s1235_s1, %s847_s28  ;;  %p854_p5 = scmp.lt.u32.totalorder %s847_s28, %s1235_s1 }
  0x15   : > { %p1076_p11 = pnand %p776_p9, %p1047_p1 }
  0x17   : > { %p849_p13 = pneg %p1076_p11 }
  0x19   : > { %p850_p0 = pnand %p849_p13, %p848_p12 }
  0x1b   : > { %p851_p3 = pneg %p850_p0 }
  0x1d   : > { %p856_p7 = pnand %p854_p5, %p851_p3 }
  0x1f   : > { %859 = shalt.err (!%p856_p7)
}
  0x20   : > { %s860_s5 = scalar_lea.vmem %s133_s23, 16384  ;;  %p868_p1 = scmp.lt.s32.totalorder %s133_s23, %s133_s23 }
  0x21   : > { %p861_p9 = scmp.ne.s32.totalorder %s133_s23, %s860_s5  ;;  %p869_p4 = scmp.lt.s32.totalorder %s860_s5, %s860_s5 }
  0x23   : > { %p863_p10 = pnand %p861_p9, %p849_p13  ;;  %p870_p8 = por %p869_p4, %p868_p1 }
  0x25   : > { %p864_p6 = pneg %p863_p10 }
  0x27   : > { %p871_p2 = pnand %p870_p8, %p864_p6 }
  0x29   : > { %874 = shalt.err (!%p871_p2)
}
  0x2a   : > { %s994_s6 = smov 256   ;;  %s995_s7 = smov 16  }
  0x2b   : > { %779 = dma.hbm_to_vmem [thread:$0]  (!%p1076_p11), %s1235_s1, 16384, %s133_s23, [#allocation7], %s994_s6, %s994_s6, %s995_s7  }
  0x2c   : > { %p33_p1 = scmp.ge.s32.totalorder %s31_s25, 2  ;;  %s40_s16 = sadd.s32 1, %s979_s11 }
  0x2d   : > { %p47_p2 = scmp.ne.s32.totalorder %s979_s11, %s975_s10  ;;  %p48_p4 = scmp.eq.s32.totalorder %s991_s14, 0 }
  0x2e   : > { %s1262_s25 = smov (%p33_p1, %s31_s25), 0  ;;  %p1248_p8 = scmp.ne.s32.totalorder %s1242_s18, 0 }
  0x2f   : > { %p1103_p6 = por %p48_p4, %p47_p2  ;;  %s35_s24 = ssub.s32 %s987_s13, %s1262_s25 }
  0x30   : > { %p1109_p10 = por %p1248_p8, %p47_p2  ;;  %p789_p12 = scmp.lt.s32.totalorder %s991_s14, 2 }
  0x31   : > { %p38_p11 = scmp.eq.s32.totalorder %s35_s24, 0  ;;  %s146_s23 = sand.u32 1, %s979_s11  }
  0x32   : > { %s624_s27 = sshll.u32 %s146_s23, 5  ;;  %s636_s29 = sshll.u32 %s987_s13, 9 }
  0x33   : > { %s1118_s28 = scalar_select %p38_p11, %s979_s11, %s40_s16  }
  0x34   : > { %s1124_s4 = scalar_lea.hbm %s1234_s0, %s636_s29  ;;  %s150_s18 = scalar_lea.vmem [#allocation3], %s624_s27 }
  0x35   : > { %s160_s5 = sshll.u32 %s150_s18, 4  ;;  %p1130_p13 = pnand %p789_p12, %p1103_p6  ;;  %s1126_s5 = int_to_ptr.vmem [resolvable:$true] %s160_s5 }
  0x36   : > { %s147_s7 = scalar_lea.sflag [#allocation4], %s146_s23  ;;  %s875_s8 = scalar_lea.hbm %s1124_s4, 512 }
  0x37   : > { %p876_p0 = scmp.ne.s32.totalorder %s1124_s4, %s875_s8  ;;  %p877_p3 = pneg %p1130_p13 }
  0x38   : > { %s880_s24 = scalar_lea.hbm %s1234_s0, 1024  ;;  %p881_p9 = scmp.lt.u32.totalorder %s1124_s4, %s1234_s0 }
  0x39   : > { %p878_p5 = pnand %p877_p3, %p876_p0  ;;  %p882_p1 = scmp.lt.u32.totalorder %s880_s24, %s875_s8 }
  0x3a   : > { %p884_p4 = scmp.lt.u32.totalorder %s875_s8, %s1124_s4 }
  0x3b   : > { %p879_p7 = pneg %p878_p5  ;;  %p883_p2 = por %p882_p1, %p881_p9 }
  0x3d   : > { %p885_p6 = por %p884_p4, %p883_p2 }
  0x3f   : > { %p886_p8 = pnand %p885_p6, %p879_p7 }
  0x41   : > { %889 = shalt.err (!%p886_p8)
}
  0x42   : > { %s890_s23 = scalar_lea.vmem %s1126_s5, 512  ;;  %s996_s29 = smov [#allocation3]  }
  0x43   : > { %p891_p12 = scmp.ne.s32.totalorder %s1126_s5, %s890_s23  ;;  %s895_s30 = sshll.u32 %s996_s29, 4  ;;  %s896_s30 = int_to_ptr.vmem [resolvable:$false] %s895_s30 }
  0x44   : > { %s897_s3 = scalar_lea.vmem %s896_s30, 1024  ;;  %p898_p5 = scmp.lt.s32.totalorder %s1126_s5, %s896_s30 }
  0x45   : > { %p893_p11 = pnand %p891_p12, %p877_p3  ;;  %p899_p9 = scmp.lt.s32.totalorder %s897_s3, %s890_s23 }
  0x47   : > { %p894_p0 = pneg %p893_p11  ;;  %p900_p1 = por %p899_p9, %p898_p5 }
  0x49   : > { %p901_p2 = pnand %p900_p1, %p894_p0 }
  0x4b   : > { %904 = shalt.err (!%p901_p2)
}
  0x4c   : > { %783 = dma.hbm_to_vmem [thread:$0]  (!%p1130_p13), %s1124_s4, 512, %s1126_s5, %s147_s7  }
  0x4d   : > { %p1251_p7 = scmp.ne.s32.totalorder %s1245_s21, 0 }
  0x4e   : > { %s1162_s18 = sand.u32 (!%p1251_p7), 1, %s975_s10   ;;  %p1252_p3 = scmp.ne.s32.totalorder (!%p1251_p7), %s1243_s19, 0 }
  0x4f   : > { %169 = sbr.rel (%p1251_p7) target bundleno = 564 (0x234), region = 28  ;;  %s628_s8 = sshll.u32 (!%p1251_p7), %s1162_s18, 5 }
  0x50   : > { %s172_s15 = scalar_lea.sflag (!%p1251_p7), [#allocation4], %s1162_s18  ;;  %s1166_s16 = scalar_lea.vmem (!%p1251_p7), [#allocation3], %s628_s8 }
  0x56   : > { %958 = dma.done.wait (%p1252_p3), %s172_s15, 512  }
  0x57   : > { %960 = vsyncadd (%p1252_p3), %s172_s15, 4294966784  ;;  %p1253_p13 = scmp.ne.s32.totalorder %s1241_s17, 0 }
  0x59   : > { %962 = dma.done.wait (%p1253_p13), [#allocation7], 16384  }
  0x5a   : > { %964 = vsyncadd (%p1253_p13), [#allocation7], 4294950912  ;;  %v215_v0 = vld [vmem:[#allocation6 + $0x8] sm:$0xff]  ;;  %v217_v1 = vld [vmem:[#allocation6 + $0x18] sm:$0xff]  ;;  %s630_s17 = sshll.u32 %s1162_s18, 4  ;;  %s637_s19 = sshll.u32 %s983_s12, 8 }
  0x5b   : > { %v279_v2 = vld [vmem:[#allocation6 + $0x208] sm:$0xff]  ;;  %v638_v3 = vpack.c.bf16 %v217_v1, %v215_v0  ;;  %v281_v4 = vld [vmem:[#allocation6 + $0x218] sm:$0xff]  ;;  %v214_v5 = vld [vmem:[#allocation6] sm:$0xff]  ;;  %s199_s21 = scalar_lea.vmem [#allocation8], %s630_s17  ;;  %s1185_s7 = scalar_lea.hbm %s1236_s2, %s637_s19 }
  0x5c   : > { %v216_v6 = vld [vmem:[#allocation6 + $0x10] sm:$0xff]  ;;  %v702_v7 = vpack.c.bf16 %v281_v4, %v279_v2  ;;  %v278_v9 = vld [vmem:[#allocation6 + $0x200] sm:$0xff]  ;;  %v219_v11 = vld [vmem:[#allocation6 + $0x28] sm:$0xff]  ;;  %s526_s4 = sshll.u32 %s199_s21, 4  ;;  %s512_s24 = scalar_lea.sflag [#allocation5], %s1162_s18  ;;  %s1187_s4 = int_to_ptr.vmem [resolvable:$true] %s526_s4 }
  0x5d   : > { %v640_v8 = vpack.c.bf16 %v216_v6, %v214_v5  ;;  %v280_v10 = vld [vmem:[#allocation6 + $0x210] sm:$0xff]  ;;  %639 = vmatprep.subr.bf16.mxu1 %v638_v3  ;;  %v221_v13 = vld [vmem:[#allocation6 + $0x38] sm:$0xff]  ;;  %v283_v14 = vld [vmem:[#allocation6 + $0x228] sm:$0xff]  ;;  %s905_s22 = scalar_lea.vmem %s1187_s4, 256  ;;  %s997_s12 = smov [#allocation8]  }
  0x5e   : > { %v704_v12 = vpack.c.bf16 %v280_v10, %v278_v9  ;;  %v285_v15 = vld [vmem:[#allocation6 + $0x238] sm:$0xff]  ;;  %703 = vmatprep.subr.bf16.mxu0 %v702_v7  ;;  %v642_v16 = vpack.c.bf16 %v221_v13, %v219_v11  ;;  %v218_v18 = vld [vmem:[#allocation6 + $0x20] sm:$0xff]  ;;  %v220_v19 = vld [vmem:[#allocation6 + $0x30] sm:$0xff]  ;;  %p906_p4 = scmp.ne.s32.totalorder %s1187_s4, %s905_s22  ;;  %s909_s27 = sshll.u32 %s997_s12, 4  ;;  %s910_s27 = int_to_ptr.vmem [resolvable:$false] %s909_s27 }
  0x5f   : > { %641 = vmatpush1.bf16.msra.mxu1 %v640_v8  ;;  %v706_v17 = vpack.c.bf16 %v285_v15, %v283_v14  ;;  %v282_v20 = vld [vmem:[#allocation6 + $0x220] sm:$0xff]  ;;  %v644_v21 = vpack.c.bf16 %v220_v19, %v218_v18  ;;  %v284_v22 = vld [vmem:[#allocation6 + $0x230] sm:$0xff]  ;;  %v223_v23 = vld [vmem:[#allocation6 + $0x48] sm:$0xff]  ;;  %s911_s23 = scalar_lea.vmem %s910_s27, 512  ;;  %p912_p12 = scmp.lt.s32.totalorder %s1187_s4, %s910_s27 }
  0x60   : > { %705 = vmatpush1.bf16.msra.mxu0 %v704_v12  ;;  %v225_v24 = vld [vmem:[#allocation6 + $0x58] sm:$0xff]  ;;  %643 = vmatprep.subr.bf16.mxu1 %v642_v16  ;;  %v708_v25 = vpack.c.bf16 %v284_v22, %v282_v20  ;;  %v287_v27 = vld [vmem:[#allocation6 + $0x248] sm:$0xff]  ;;  %v222_v29 = vld [vmem:[#allocation6 + $0x40] sm:$0xff]  ;;  %p907_p6 = pnand %p906_p4, %p1109_p10  ;;  %p913_p11 = scmp.lt.s32.totalorder %s911_s23, %s905_s22 }
  0x61   : > { %707 = vmatprep.subr.bf16.mxu0 %v706_v17  ;;  %v646_v26 = vpack.c.bf16 %v225_v24, %v223_v23  ;;  %v289_v28 = vld [vmem:[#allocation6 + $0x258] sm:$0xff]  ;;  %v224_v31 = vld [vmem:[#allocation6 + $0x50] sm:$0xff]  ;;  %v286_v32 = vld [vmem:[#allocation6 + $0x240] sm:$0xff] }
  0x62   : > { %v710_v30 = vpack.c.bf16 %v289_v28, %v287_v27  ;;  %v288_v33 = vld [vmem:[#allocation6 + $0x250] sm:$0xff]  ;;  %v648_v34 = vpack.c.bf16 %v224_v31, %v222_v29  ;;  %v227_v35 = vld [vmem:[#allocation6 + $0x68] sm:$0xff]  ;;  %v229_v36 = vld [vmem:[#allocation6 + $0x78] sm:$0xff]  ;;  %p908_p8 = pneg %p907_p6  ;;  %p914_p0 = por %p913_p11, %p912_p12 }
  0x63   : > { %645 = vmatpush1.bf16.msra.mxu1 %v644_v21  ;;  %v291_v37 = vld [vmem:[#allocation6 + $0x268] sm:$0xff]  ;;  %v712_v38 = vpack.c.bf16 %v288_v33, %v286_v32  ;;  %v650_v39 = vpack.c.bf16 %v229_v36, %v227_v35  ;;  %v293_v40 = vld [vmem:[#allocation6 + $0x278] sm:$0xff]  ;;  %v226_v41 = vld [vmem:[#allocation6 + $0x60] sm:$0xff] }
  0x64   : > { %709 = vmatpush1.bf16.msra.mxu0 %v708_v25  ;;  %647 = vmatprep.subr.bf16.mxu1 %v646_v26  ;;  %v228_v42 = vld [vmem:[#allocation6 + $0x70] sm:$0xff]  ;;  %v714_v43 = vpack.c.bf16 %v293_v40, %v291_v37  ;;  %v290_v44 = vld [vmem:[#allocation6 + $0x260] sm:$0xff]  ;;  %v231_v46 = vld [vmem:[#allocation6 + $0x88] sm:$0xff]  ;;  %p915_p5 = pnand %p914_p0, %p908_p8 }
  0x65   : > { %711 = vmatprep.subr.bf16.mxu0 %v710_v30  ;;  %v292_v45 = vld [vmem:[#allocation6 + $0x270] sm:$0xff]  ;;  %v233_v47 = vld [vmem:[#allocation6 + $0x98] sm:$0xff]  ;;  %v295_v48 = vld [vmem:[#allocation6 + $0x288] sm:$0xff]  ;;  %v652_v50 = vpack.c.bf16 %v228_v42, %v226_v41 }
  0x66   : > { %v297_v49 = vld [vmem:[#allocation6 + $0x298] sm:$0xff]  ;;  %v716_v51 = vpack.c.bf16 %v292_v45, %v290_v44  ;;  %v654_v52 = vpack.c.bf16 %v233_v47, %v231_v46  ;;  %v230_v53 = vld [vmem:[#allocation6 + $0x80] sm:$0xff]  ;;  %v232_v54 = vld [vmem:[#allocation6 + $0x90] sm:$0xff] }
  0x67   : > { %649 = vmatpush1.bf16.msra.mxu1 %v648_v34  ;;  %v294_v55 = vld [vmem:[#allocation6 + $0x280] sm:$0xff]  ;;  %v718_v56 = vpack.c.bf16 %v297_v49, %v295_v48  ;;  %v296_v57 = vld [vmem:[#allocation6 + $0x290] sm:$0xff]  ;;  %v235_v58 = vld [vmem:[#allocation6 + $0xa8] sm:$0xff]  ;;  %v656_v62 = vpack.c.bf16 %v232_v54, %v230_v53 }
  0x68   : > { %713 = vmatpush1.bf16.msra.mxu0 %v712_v38  ;;  %651 = vmatprep.subr.bf16.mxu1 %v650_v39  ;;  %v237_v59 = vld [vmem:[#allocation6 + $0xb8] sm:$0xff]  ;;  %v299_v60 = vld [vmem:[#allocation6 + $0x2a8] sm:$0xff]  ;;  %v720_v63 = vpack.c.bf16 %v296_v57, %v294_v55  ;;  %v234_v1 = vld [vmem:[#allocation6 + $0xa0] sm:$0xff] }
  0x69   : > { %715 = vmatprep.subr.bf16.mxu0 %v714_v43  ;;  %v301_v61 = vld [vmem:[#allocation6 + $0x2b8] sm:$0xff]  ;;  %v658_v0 = vpack.c.bf16 %v237_v59, %v235_v58  ;;  %v236_v2 = vld [vmem:[#allocation6 + $0xb0] sm:$0xff]  ;;  %v298_v3 = vld [vmem:[#allocation6 + $0x2a0] sm:$0xff] }
  0x6a   : > { %v722_v4 = vpack.c.bf16 %v301_v61, %v299_v60  ;;  %v300_v5 = vld [vmem:[#allocation6 + $0x2b0] sm:$0xff]  ;;  %v239_v6 = vld [vmem:[#allocation6 + $0xc8] sm:$0xff]  ;;  %v241_v7 = vld [vmem:[#allocation6 + $0xd8] sm:$0xff]  ;;  %v660_v10 = vpack.c.bf16 %v236_v2, %v234_v1 }
  0x6b   : > { %653 = vmatpush1.bf16.msra.mxu1 %v652_v50  ;;  %v303_v8 = vld [vmem:[#allocation6 + $0x2c8] sm:$0xff]  ;;  %v305_v9 = vld [vmem:[#allocation6 + $0x2d8] sm:$0xff]  ;;  %v724_v11 = vpack.c.bf16 %v300_v5, %v298_v3  ;;  %v662_v12 = vpack.c.bf16 %v241_v7, %v239_v6  ;;  %v238_v13 = vld [vmem:[#allocation6 + $0xc0] sm:$0xff] }
  0x6c   : > { %717 = vmatpush1.bf16.msra.mxu0 %v716_v51  ;;  %655 = vmatprep.subr.bf16.mxu1 %v654_v52  ;;  %v240_v14 = vld [vmem:[#allocation6 + $0xd0] sm:$0xff]  ;;  %v302_v15 = vld [vmem:[#allocation6 + $0x2c0] sm:$0xff]  ;;  %v726_v16 = vpack.c.bf16 %v305_v9, %v303_v8  ;;  %v243_v18 = vld [vmem:[#allocation6 + $0xe8] sm:$0xff] }
  0x6d   : > { %719 = vmatprep.subr.bf16.mxu0 %v718_v56  ;;  %v304_v17 = vld [vmem:[#allocation6 + $0x2d0] sm:$0xff]  ;;  %v245_v19 = vld [vmem:[#allocation6 + $0xf8] sm:$0xff]  ;;  %v307_v20 = vld [vmem:[#allocation6 + $0x2e8] sm:$0xff]  ;;  %v664_v22 = vpack.c.bf16 %v240_v14, %v238_v13 }
  0x6e   : > { %v309_v21 = vld [vmem:[#allocation6 + $0x2f8] sm:$0xff]  ;;  %v728_v23 = vpack.c.bf16 %v304_v17, %v302_v15  ;;  %v666_v24 = vpack.c.bf16 %v245_v19, %v243_v18  ;;  %v242_v25 = vld [vmem:[#allocation6 + $0xe0] sm:$0xff]  ;;  %v244_v26 = vld [vmem:[#allocation6 + $0xf0] sm:$0xff] }
  0x6f   : > { %657 = vmatpush1.bf16.msra.mxu1 %v656_v62  ;;  %v306_v27 = vld [vmem:[#allocation6 + $0x2e0] sm:$0xff]  ;;  %v730_v28 = vpack.c.bf16 %v309_v21, %v307_v20  ;;  %v308_v29 = vld [vmem:[#allocation6 + $0x2f0] sm:$0xff]  ;;  %v247_v30 = vld [vmem:[#allocation6 + $0x108] sm:$0xff]  ;;  %v668_v34 = vpack.c.bf16 %v244_v26, %v242_v25 }
  0x70   : > { %721 = vmatpush1.bf16.msra.mxu0 %v720_v63  ;;  %659 = vmatprep.subr.bf16.mxu1 %v658_v0  ;;  %v249_v31 = vld [vmem:[#allocation6 + $0x118] sm:$0xff]  ;;  %v311_v32 = vld [vmem:[#allocation6 + $0x308] sm:$0xff]  ;;  %v732_v35 = vpack.c.bf16 %v308_v29, %v306_v27  ;;  %v246_v37 = vld [vmem:[#allocation6 + $0x100] sm:$0xff] }
  0x71   : > { %723 = vmatprep.subr.bf16.mxu0 %v722_v4  ;;  %v313_v33 = vld [vmem:[#allocation6 + $0x318] sm:$0xff]  ;;  %v670_v36 = vpack.c.bf16 %v249_v31, %v247_v30  ;;  %v248_v38 = vld [vmem:[#allocation6 + $0x110] sm:$0xff]  ;;  %v310_v39 = vld [vmem:[#allocation6 + $0x300] sm:$0xff] }
  0x72   : > { %v734_v40 = vpack.c.bf16 %v313_v33, %v311_v32  ;;  %v312_v41 = vld [vmem:[#allocation6 + $0x310] sm:$0xff]  ;;  %v251_v42 = vld [vmem:[#allocation6 + $0x128] sm:$0xff]  ;;  %v253_v43 = vld [vmem:[#allocation6 + $0x138] sm:$0xff]  ;;  %v672_v46 = vpack.c.bf16 %v248_v38, %v246_v37 }
  0x73   : > { %661 = vmatpush1.bf16.msra.mxu1 %v660_v10  ;;  %v315_v44 = vld [vmem:[#allocation6 + $0x328] sm:$0xff]  ;;  %v317_v45 = vld [vmem:[#allocation6 + $0x338] sm:$0xff]  ;;  %v736_v47 = vpack.c.bf16 %v312_v41, %v310_v39  ;;  %v674_v48 = vpack.c.bf16 %v253_v43, %v251_v42  ;;  %v250_v49 = vld [vmem:[#allocation6 + $0x120] sm:$0xff] }
  0x74   : > { %725 = vmatpush1.bf16.msra.mxu0 %v724_v11  ;;  %663 = vmatprep.subr.bf16.mxu1 %v662_v12  ;;  %v252_v50 = vld [vmem:[#allocation6 + $0x130] sm:$0xff]  ;;  %v314_v51 = vld [vmem:[#allocation6 + $0x320] sm:$0xff]  ;;  %v738_v52 = vpack.c.bf16 %v317_v45, %v315_v44  ;;  %v255_v54 = vld [vmem:[#allocation6 + $0x148] sm:$0xff] }
  0x75   : > { %727 = vmatprep.subr.bf16.mxu0 %v726_v16  ;;  %v316_v53 = vld [vmem:[#allocation6 + $0x330] sm:$0xff]  ;;  %v257_v55 = vld [vmem:[#allocation6 + $0x158] sm:$0xff]  ;;  %v319_v56 = vld [vmem:[#allocation6 + $0x348] sm:$0xff]  ;;  %v676_v58 = vpack.c.bf16 %v252_v50, %v250_v49 }
  0x76   : > { %v321_v57 = vld [vmem:[#allocation6 + $0x358] sm:$0xff]  ;;  %v740_v59 = vpack.c.bf16 %v316_v53, %v314_v51  ;;  %v678_v60 = vpack.c.bf16 %v257_v55, %v255_v54  ;;  %v254_v61 = vld [vmem:[#allocation6 + $0x140] sm:$0xff]  ;;  %v256_v62 = vld [vmem:[#allocation6 + $0x150] sm:$0xff] }
  0x77   : > { %665 = vmatpush1.bf16.msra.mxu1 %v664_v22  ;;  %v318_v63 = vld [vmem:[#allocation6 + $0x340] sm:$0xff]  ;;  %v742_v0 = vpack.c.bf16 %v321_v57, %v319_v56  ;;  %v320_v1 = vld [vmem:[#allocation6 + $0x350] sm:$0xff]  ;;  %v259_v2 = vld [vmem:[#allocation6 + $0x168] sm:$0xff]  ;;  %v680_v6 = vpack.c.bf16 %v256_v62, %v254_v61 }
  0x78   : > { %729 = vmatpush1.bf16.msra.mxu0 %v728_v23  ;;  %667 = vmatprep.subr.bf16.mxu1 %v666_v24  ;;  %v261_v3 = vld [vmem:[#allocation6 + $0x178] sm:$0xff]  ;;  %v323_v4 = vld [vmem:[#allocation6 + $0x368] sm:$0xff]  ;;  %v258_v7 = vld [vmem:[#allocation6 + $0x160] sm:$0xff]  ;;  %v744_v8 = vpack.c.bf16 %v320_v1, %v318_v63 }
  0x79   : > { %731 = vmatprep.subr.bf16.mxu0 %v730_v28  ;;  %v325_v5 = vld [vmem:[#allocation6 + $0x378] sm:$0xff]  ;;  %v682_v9 = vpack.c.bf16 %v261_v3, %v259_v2  ;;  %v260_v10 = vld [vmem:[#allocation6 + $0x170] sm:$0xff]  ;;  %v322_v11 = vld [vmem:[#allocation6 + $0x360] sm:$0xff] }
  0x7a   : > { %v324_v12 = vld [vmem:[#allocation6 + $0x370] sm:$0xff]  ;;  %v746_v13 = vpack.c.bf16 %v325_v5, %v323_v4  ;;  %v263_v14 = vld [vmem:[#allocation6 + $0x188] sm:$0xff]  ;;  %v265_v15 = vld [vmem:[#allocation6 + $0x198] sm:$0xff]  ;;  %v684_v20 = vpack.c.bf16 %v260_v10, %v258_v7 }
  0x7b   : > { %669 = vmatpush1.bf16.msra.mxu1 %v668_v34  ;;  %v211_v16 = vld [vmem:[%s1166_s16 + $0x8] sm:$0xff]  ;;  %v329_v18 = vld [vmem:[#allocation6 + $0x398] sm:$0xff]  ;;  %v748_v21 = vpack.c.bf16 %v324_v12, %v322_v11  ;;  %v686_v22 = vpack.c.bf16 %v265_v15, %v263_v14  ;;  %v262_v23 = vld [vmem:[#allocation6 + $0x180] sm:$0xff] }
  0x7c   : > { %733 = vmatpush1.bf16.msra.mxu0 %v732_v35  ;;  %671 = vmatprep.subr.bf16.mxu1 %v670_v36  ;;  %v327_v17 = vld [vmem:[#allocation6 + $0x388] sm:$0xff]  ;;  %v213_v19 = vld [vmem:[%s1166_s16 + $0x18] sm:$0xff]  ;;  %v264_v24 = vld [vmem:[#allocation6 + $0x190] sm:$0xff] }
  0x7d   : > { %735 = vmatprep.subr.bf16.mxu0 %v734_v40  ;;  %406 = vmatprep.mubr.f32.mxu1 %v211_v16  ;;  %v326_v25 = vld [vmem:[#allocation6 + $0x380] sm:$0xff]  ;;  %v750_v26 = vpack.c.bf16 %v329_v18, %v327_v17  ;;  %v328_v27 = vld [vmem:[#allocation6 + $0x390] sm:$0xff]  ;;  %v267_v28 = vld [vmem:[#allocation6 + $0x1a8] sm:$0xff]  ;;  %v688_v32 = vpack.c.bf16 %v264_v24, %v262_v23 }
  0x7e   : > { %477 = vmatprep.mubr.f32.mxu0 %v213_v19  ;;  %v269_v29 = vld [vmem:[#allocation6 + $0x1b8] sm:$0xff]  ;;  %v331_v30 = vld [vmem:[#allocation6 + $0x3a8] sm:$0xff]  ;;  %v752_v33 = vpack.c.bf16 %v328_v27, %v326_v25  ;;  %v266_v35 = vld [vmem:[#allocation6 + $0x1a0] sm:$0xff] }
  0x7f   : > { %673 = vmatpush1.bf16.msra.mxu1 %v672_v46  ;;  %v333_v31 = vld [vmem:[#allocation6 + $0x3b8] sm:$0xff]  ;;  %v690_v34 = vpack.c.bf16 %v269_v29, %v267_v28  ;;  %v268_v36 = vld [vmem:[#allocation6 + $0x1b0] sm:$0xff]  ;;  %v330_v37 = vld [vmem:[#allocation6 + $0x3a0] sm:$0xff] }
  0x80   : > { %737 = vmatpush1.bf16.msra.mxu0 %v736_v47  ;;  %675 = vmatprep.subr.bf16.mxu1 %v674_v48  ;;  %v754_v38 = vpack.c.bf16 %v333_v31, %v331_v30  ;;  %v332_v39 = vld [vmem:[#allocation6 + $0x3b0] sm:$0xff]  ;;  %v271_v40 = vld [vmem:[#allocation6 + $0x1c8] sm:$0xff]  ;;  %v273_v41 = vld [vmem:[#allocation6 + $0x1d8] sm:$0xff]  ;;  %v692_v44 = vpack.c.bf16 %v268_v36, %v266_v35 }
  0x81   : > { %739 = vmatprep.subr.bf16.mxu0 %v738_v52  ;;  %v335_v42 = vld [vmem:[#allocation6 + $0x3c8] sm:$0xff]  ;;  %v337_v43 = vld [vmem:[#allocation6 + $0x3d8] sm:$0xff]  ;;  %v756_v45 = vpack.c.bf16 %v332_v39, %v330_v37  ;;  %v694_v46 = vpack.c.bf16 %v273_v41, %v271_v40  ;;  %v270_v47 = vld [vmem:[#allocation6 + $0x1c0] sm:$0xff] }
  0x82   : > { %v272_v48 = vld [vmem:[#allocation6 + $0x1d0] sm:$0xff]  ;;  %v334_v49 = vld [vmem:[#allocation6 + $0x3c0] sm:$0xff]  ;;  %v758_v50 = vpack.c.bf16 %v337_v43, %v335_v42  ;;  %v275_v52 = vld [vmem:[#allocation6 + $0x1e8] sm:$0xff] }
  0x83   : > { %677 = vmatpush1.bf16.msra.mxu1 %v676_v58  ;;  %v336_v51 = vld [vmem:[#allocation6 + $0x3d0] sm:$0xff]  ;;  %v277_v53 = vld [vmem:[#allocation6 + $0x1f8] sm:$0xff]  ;;  %v339_v54 = vld [vmem:[#allocation6 + $0x3e8] sm:$0xff]  ;;  %v696_v56 = vpack.c.bf16 %v272_v48, %v270_v47 }
  0x84   : > { %741 = vmatpush1.bf16.msra.mxu0 %v740_v59  ;;  %679 = vmatprep.subr.bf16.mxu1 %v678_v60  ;;  %v341_v55 = vld [vmem:[#allocation6 + $0x3f8] sm:$0xff]  ;;  %v760_v57 = vpack.c.bf16 %v336_v51, %v334_v49  ;;  %v698_v58 = vpack.c.bf16 %v277_v53, %v275_v52  ;;  %v274_v59 = vld [vmem:[#allocation6 + $0x1e0] sm:$0xff]  ;;  %v276_v60 = vld [vmem:[#allocation6 + $0x1f0] sm:$0xff] }
  0x85   : > { %743 = vmatprep.subr.bf16.mxu0 %v742_v0  ;;  %v762_v61 = vpack.c.bf16 %v341_v55, %v339_v54  ;;  %v338_v62 = vld [vmem:[#allocation6 + $0x3e0] sm:$0xff]  ;;  %v340_v63 = vld [vmem:[#allocation6 + $0x3f0] sm:$0xff]  ;;  %v700_v0 = vpack.c.bf16 %v276_v60, %v274_v59 }
  0x86   : > { %v764_v1 = vpack.c.bf16 %v340_v63, %v338_v62  ;;  %v210_v2 = vld [vmem:[%s1166_s16] sm:$0xff]  ;;  %v212_v3 = vld [vmem:[%s1166_s16 + $0x10] sm:$0xff] }
  0x87   : > { %681 = vmatpush1.bf16.msra.mxu1 %v680_v6 }
  0x88   : > { %745 = vmatpush1.bf16.msra.mxu0 %v744_v8  ;;  %683 = vmatprep.subr.bf16.mxu1 %v682_v9 }
  0x89   : > { %747 = vmatprep.subr.bf16.mxu0 %v746_v13 }
  0x8b   : > { %685 = vmatpush1.bf16.msra.mxu1 %v684_v20 }
  0x8c   : > { %749 = vmatpush1.bf16.msra.mxu0 %v748_v21  ;;  %687 = vmatprep.subr.bf16.mxu1 %v686_v22 }
  0x8d   : > { %751 = vmatprep.subr.bf16.mxu0 %v750_v26 }
  0x8f   : > { %689 = vmatpush1.bf16.msra.mxu1 %v688_v32 }
  0x90   : > { %753 = vmatpush1.bf16.msra.mxu0 %v752_v33  ;;  %691 = vmatprep.subr.bf16.mxu1 %v690_v34 }
  0x91   : > { %755 = vmatprep.subr.bf16.mxu0 %v754_v38 }
  0x93   : > { %693 = vmatpush1.bf16.msra.mxu1 %v692_v44 }
  0x94   : > { %757 = vmatpush1.bf16.msra.mxu0 %v756_v45  ;;  %695 = vmatprep.subr.bf16.mxu1 %v694_v46 }
  0x95   : > { %759 = vmatprep.subr.bf16.mxu0 %v758_v50 }
  0x97   : > { %697 = vmatpush1.bf16.msra.mxu1 %v696_v56 }
  0x98   : > { %761 = vmatpush1.bf16.msra.mxu0 %v760_v57  ;;  %699 = vmatprep.subr.bf16.mxu1 %v698_v58 }
  0x99   : > { %763 = vmatprep.subr.bf16.mxu0 %v762_v61 }
  0x9b   : > { %701 = vmatpush1.bf16.msra.mxu1 %v700_v0 }
  0x9c   : > { %765 = vmatpush1.bf16.msra.mxu0 %v764_v1 }
  0x9e   : > { %407 = vmatmul.mubr.f32.vlgmr.msra.gmra.mrb[0].mxu1 %v210_v2 }
  0x9f   : > { %478 = vmatmul.mubr.f32.vlgmr.msra.gmra.mrb[0].mxu0 %v212_v3 }
 0x171   : > { %v408_v4 = vpop.f32.mrb[0].mxu1 }
 0x172   : > { %v479_v5 = vpop.f32.mrb[0].mxu0  ;;  %v410_v6 = vpop.f32.mrb[1].mxu1 }
 0x173   : > { %v480_v7 = vadd.f32 %v479_v5, %v408_v4  ;;  %v481_v8 = vpop.f32.mrb[1].mxu0 }
 0x174   : > { %v482_v9 = vadd.f32 %v481_v8, %v410_v6 }
 0x175   : > { %v493_v10 = vmul.f32 %v480_v7, %v480_v7 }
 0x176   : > { %v494_v11 = vmul.f32 %v482_v9, %v482_v9 }
 0x178   : > { %v495_v12 = vadd.f32 %v494_v11, %v493_v10 }
 0x17a   : > { %496 = vadd.xlane.f32.xlu0 %v495_v12 }
 0x207   : > { %v497_v13 = vpop.xlane.xlu0 %496 }
 0x208   : > { %843 = vrsqrt.f32 %v497_v13  ;;  %vm500_vm0 = vcmp.eq.f32.partialorder %v497_v13, inf  ;;  %v503_v16 = vand.u32 2147483648, %v497_v13  ;;  %vm502_vm1 = vcmp.eq.f32.partialorder %v497_v13, 0.0 }
 0x212   : > { %v844_v14 = vpop.eup %843 }
 0x213   : > { %v499_v15 = vmul.f32 %v844_v14, %v497_v13 }
 0x215   : > { %v501_v17 = vsel %vm500_vm0, %v497_v13, %v499_v15 }
 0x216   : > { %v504_v18 = vsel %vm502_vm1, %v503_v16, %v501_v17 }
 0x217   : > { %v505_v19 = vadd.f32 1e-07, %v504_v18 }
 0x219   : > { %845 = vrcp.f32 %v505_v19 }
 0x223   : > { %v846_v20 = vpop.eup %845 }
 0x224   : > { %v507_v21 = vmul.f32 %v846_v20, %v480_v7  ;;  %v508_v22 = vmul.f32 %v846_v20, %v482_v9 }
 0x226   : > { %509 = vst [vmem:[%s199_s21] sm:$0xff] %v507_v21  ;;  %510 = vst [vmem:[%s199_s21 + $0x8] sm:$0xff] %v508_v22 }
 0x227   : > { %918 = shalt.err (!%p915_p5)
}
 0x228   : > { %s919_s29 = scalar_lea.hbm %s1185_s7, 256  ;;  %s923_s18 = scalar_lea.hbm %s1236_s2, 512 }
 0x229   : > { %p920_p9 = scmp.ne.s32.totalorder %s1185_s7, %s919_s29  ;;  %p924_p7 = scmp.lt.u32.totalorder %s1185_s7, %s1236_s2 }
 0x22a   : > { %p925_p3 = scmp.lt.u32.totalorder %s923_s18, %s919_s29  ;;  %p927_p4 = scmp.lt.u32.totalorder %s919_s29, %s1185_s7 }
 0x22b   : > { %p921_p1 = pnand %p920_p9, %p1109_p10 }
 0x22c   : > { %p926_p13 = por %p925_p3, %p924_p7 }
 0x22d   : > { %p922_p2 = pneg %p921_p1 }
 0x22e   : > { %p928_p6 = por %p927_p4, %p926_p13 }
 0x230   : > { %p929_p8 = pnand %p928_p6, %p922_p2 }
 0x232   : > { %932 = shalt.err (!%p929_p8)
}
 0x233   : > { %774 = dma.vmem_to_hbm [thread:$0]  (%p1109_p10), %s1187_s4, 256, %s1185_s7, %s512_s24  }
 0x234 PF: > { %s538_s16 = sand.u32 1, %s971_s9   ;;  %p1254_p12 = scmp.ne.s32.totalorder %s1244_s20, 0 }
 0x235   : > { %p1255_p11 = scmp.ge.s32.totalorder %s991_s14, 2  ;;  %s539_s17 = scalar_lea.sflag [#allocation5], %s538_s16 }
 0x237   : > { %p785_p0 = pnand %p1255_p11, %p1254_p12 }
 0x239   : > { %966 = dma.done.wait (!%p785_p0), %s539_s17, 256  }
 0x23a   : > { %968 = vsyncadd (!%p785_p0), %s539_s17, 4294967040  ;;  %s19_s14 = sadd.s32 1, %s991_s14   ;;  %s1256_s9 = smov %s975_s10 }
 0x23b   : > { %p16_p5 = scmp.ge.s32.totalorder %s19_s14, 4   ;;  %s1257_s10 = smov %s979_s11 }
 0x23c   : > { %s1258_s11 = smov %s1118_s28  ;;  %s1259_s12 = smov %s987_s13 }
 0x23d   : > { %s1260_s13 = smov %s1262_s25  ;;  %18 = sbr.rel (!%p16_p5) target bundleno = 7 (0x7), region = 86 }
 0x244   :  { %544 = vsyncpa [#allocation4], 1 }
 0x245   :  { %546 = vsyncpa [#allocation4 + $0x1], 1 }
 0x246   :  { %547 = vsyncpa [#allocation7], 1 }
 0x247   :  { %548 = vsyncpa [#allocation5], 1 }
 0x248   :  { %550 = vsyncpa [#allocation5 + $0x1], 1 }

</bundles_post_ra>
